<compile_context>
chip_gen: v5e
topology: v5e:2x2
jax: 0.10.0
libtpu: 0.0.40
codegen_flags: <defaults>
</compile_context>

<pallas_src>
import jax
import jax.numpy as jnp
from jax.experimental import pallas as pl
from jax.experimental.pallas import tpu as pltpu


def _round_up(n, m):
    return (n + m - 1) // m * m


def _vmem_budget_bytes():
    # ~75% of physical VMEM: 128 MiB (v5e/v6e) -> 96 MiB, 64 MiB (v7x) -> 48 MiB.
    # Fall back to the v7x-safe value if the query is unavailable.
    try:
        cap = pltpu.get_tpu_info().vmem_capacity_bytes
    except Exception:
        cap = 64 * 1024 * 1024
    return max(32 * 1024 * 1024, int(cap) * 3 // 4)


def _norm_residual_kernel(x_ref, w_ref, b_ref, o_ref):
    # x_ref: (tile, D) rows; w_ref: (D, D) in (in, out) layout; b_ref: (1, D).
    x = x_ref[...]
    xf = x.astype(jnp.float32)

    # L2 norm over the last dim in f32; rsqrt runs on the EUP slot (free vs a
    # VPU divide). All-zero rows give rsqrt(0)=inf -> NaN, matching PyTorch's
    # x / ||x|| semantics (no epsilon). Garbage rows of a partial last tile
    # are row-local and their output writes are masked by Pallas.
    sq_sum = jnp.sum(xf * xf, axis=-1, keepdims=True)
    inv_norm = jax.lax.rsqrt(sq_sum)
    xn_f32 = xf * inv_norm

    # Feed the MXU in the input's native dtype (bf16 stays bf16); accumulate f32.
    xn = xn_f32.astype(x_ref.dtype)
    y = jnp.dot(xn, w_ref[...], preferred_element_type=jnp.float32)
    y = y + b_ref[...].astype(jnp.float32)

    # residual: layers(x/||x||) + x/||x||
    o_ref[...] = (y + xn_f32).astype(o_ref.dtype)


def norm_residual(x, weight_t, bias, *, tile_rows=4096):
    """NormResidual(Linear(D, D)) forward.

    x:        (..., D) input.
    weight_t: (D, D) Linear weight already transposed to (in, out) layout
              (transpose once at parameter-setup time, not per call).
    bias:     (D,)
    """
    *lead, D = x.shape
    N = 1
    for s in lead:
        N *= s
    x2d = x.reshape(N, D)          # merging contiguous leading dims: no copy
    b2d = bias.reshape(1, D)

    itemsize = jnp.dtype(x.dtype).itemsize
    sublane = 8 if itemsize >= 4 else 32 // itemsize    # f32: 8, bf16: 16

    budget = _vmem_budget_bytes()

    def footprint(t):
        return (4 * t * D * itemsize        # x + out blocks, double buffered
                + 3 * t * D * 4             # in-kernel f32 temporaries
                + 2 * D * D * itemsize      # resident weight (double buffered)
                + 2 * D * itemsize)         # bias

    tile = min(_round_up(tile_rows, sublane), _round_up(N, sublane))
    tile = max(tile, sublane)
    while tile > sublane and footprint(tile) > budget:
        tile = max(sublane, _round_up(tile // 2, sublane))

    # Ragged last tile handled by Pallas partial blocks; no row padding, no
    # even-grid bump (1-TC chips would pay a full dead tile for it).
    grid = pl.cdiv(N, tile)

    out2d = pl.pallas_call(
        _norm_residual_kernel,
        out_shape=jax.ShapeDtypeStruct((N, D), x.dtype),
        grid_spec=pltpu.PrefetchScalarGridSpec(
            num_scalar_prefetch=0,
            grid=(grid,),
            in_specs=[
                pl.BlockSpec((tile, D), lambda i: (i, 0)),   # x row tile
                pl.BlockSpec((D, D), lambda i: (0, 0)),      # weight (resident)
                pl.BlockSpec((1, D), lambda i: (0, 0)),      # bias (resident)
            ],
            out_specs=pl.BlockSpec((tile, D), lambda i: (i, 0)),
        ),
        compiler_params=pltpu.CompilerParams(
            dimension_semantics=("parallel",),
            vmem_limit_bytes=int(min(budget,
                                     max(32 * 1024 * 1024,
                                         2 * footprint(tile)))),
        ),
    )(x2d, weight_t, b2d)

    return out2d.reshape(x.shape)


def _reference(x, weight, bias):
    # Pure-JAX reference mirroring the PyTorch forward (weight in torch layout).
    norm = jnp.linalg.norm(x, axis=-1, keepdims=True)
    xn = x / norm
    out = xn @ weight.T + bias
    return out + xn


if __name__ == "__main__":
    B, T, D = 2, 8, 32
    key = jax.random.PRNGKey(0)
    kx, kw, kb = jax.random.split(key, 3)

    x = jax.random.normal(kx, (B, T, D), dtype=jnp.float32)

    # Deterministic PyTorch-default Linear init: U(-1/sqrt(D), 1/sqrt(D)).
    bound = 1.0 / (D ** 0.5)
    weight = jax.random.uniform(kw, (D, D), minval=-bound, maxval=bound,
                                dtype=jnp.float32)
    bias = jax.random.uniform(kb, (D,), minval=-bound, maxval=bound,
                              dtype=jnp.float32)

    # Hoisted parameter prep (done once, not per forward call).
    weight_t = weight.T

    out = norm_residual(x, weight_t, bias)
    out = jax.block_until_ready(out)

    ref = _reference(x, weight, bias)
    assert out.shape == (B, T, D)
    assert jnp.allclose(out, ref, atol=1e-5, rtol=1e-5), "mismatch vs reference"

    print("KERNEL_OK")
</pallas_src>

<mosaic_0001>
module attributes {stable_mosaic.version = 11 : i64} {
  func.func @_norm_residual_kernel(%arg0: i32, %arg1: memref<16x32xf32, #tpu.memory_space<vmem>>, %arg2: memref<32x32xf32, #tpu.memory_space<vmem>>, %arg3: memref<1x32xf32, #tpu.memory_space<vmem>>, %arg4: memref<16x32xf32, #tpu.memory_space<vmem>>) attributes {dimension_semantics = [#tpu.dimension_semantics<parallel>], iteration_bounds = array<i64: 1>, scalar_prefetch = 0 : i64, scratch_operands = 0 : i64, tpu.core_type = #tpu.core_type<tc>, window_params = [{transform_indices = @transform_0, window_bounds = array<i64: 16, 32>}, {pipeline_mode = #tpu.pipeline_mode<synchronous>, transform_indices = @transform_1, window_bounds = array<i64: 32, 32>}, {pipeline_mode = #tpu.pipeline_mode<synchronous>, transform_indices = @transform_2, window_bounds = array<i64: 1, 32>}, {transform_indices = @transform_3, window_bounds = array<i64: 16, 32>}]} {
    %c0 = arith.constant 0 : index
    %c0_0 = arith.constant 0 : index
    %0 = vector.load %arg1[%c0, %c0_0] : memref<16x32xf32, #tpu.memory_space<vmem>>, vector<16x32xf32>
    %1 = arith.mulf %0, %0 : vector<16x32xf32>
    %cst = arith.constant dense<0.000000e+00> : vector<16xf32>
    %2 = vector.multi_reduction <add>, %1, %cst [1] : vector<16x32xf32> to vector<16xf32>
    %3 = vector.shape_cast %2 : vector<16xf32> to vector<16x1xf32>
    %4 = math.rsqrt %3 : vector<16x1xf32>
    %5 = vector.broadcast %4 : vector<16x1xf32> to vector<16x32xf32>
    %6 = arith.mulf %0, %5 : vector<16x32xf32>
    %c0_1 = arith.constant 0 : index
    %c0_2 = arith.constant 0 : index
    %7 = vector.load %arg2[%c0_1, %c0_2] : memref<32x32xf32, #tpu.memory_space<vmem>>, vector<32x32xf32>
    %cst_3 = arith.constant dense<0.000000e+00> : vector<16x32xf32>
    %8 = tpu.matmul %6, %7, %cst_3 {dimension_numbers = #tpu.dot_dimension_numbers<[1], [0], [0], [1], [0, 0, 1, 1], [], []>} : vector<16x32xf32>, vector<32x32xf32>, vector<16x32xf32> -> vector<16x32xf32>
    %c0_4 = arith.constant 0 : index
    %c0_5 = arith.constant 0 : index
    %9 = vector.load %arg3[%c0_4, %c0_5] : memref<1x32xf32, #tpu.memory_space<vmem>>, vector<1x32xf32>
    %10 = vector.broadcast %9 : vector<1x32xf32> to vector<16x32xf32>
    %11 = arith.addf %8, %10 : vector<16x32xf32>
    %12 = arith.addf %11, %6 : vector<16x32xf32>
    %c0_6 = arith.constant 0 : index
    %c0_7 = arith.constant 0 : index
    %13 = vector.load %arg4[%c0_6, %c0_7] : memref<16x32xf32, #tpu.memory_space<vmem>>, vector<16x32xf32>
    tpu.vector_store %arg4[%c0_6, %c0_7], %12 {strides = array<i32>} : memref<16x32xf32, #tpu.memory_space<vmem>>, vector<16x32xf32>,
    return
  }
  func.func @transform_0(%arg0: i32) -> (i32, i32) {
    %c0_i32 = arith.constant 0 : i32
    %c0_i32_0 = arith.constant 0 : i32
    return %arg0, %c0_i32 : i32, i32
  }
  func.func @transform_1(%arg0: i32) -> (i32, i32) {
    %c0_i32 = arith.constant 0 : i32
    %c0_i32_0 = arith.constant 0 : i32
    %c0_i32_1 = arith.constant 0 : i32
    return %c0_i32, %c0_i32_0 : i32, i32
  }
  func.func @transform_2(%arg0: i32) -> (i32, i32) {
    %c0_i32 = arith.constant 0 : i32
    %c0_i32_0 = arith.constant 0 : i32
    %c0_i32_1 = arith.constant 0 : i32
    return %c0_i32, %c0_i32_0 : i32, i32
  }
  func.func @transform_3(%arg0: i32) -> (i32, i32) {
    %c0_i32 = arith.constant 0 : i32
    %c0_i32_0 = arith.constant 0 : i32
    return %arg0, %c0_i32 : i32, i32
  }
}

</mosaic_0001>

<bundles_post_ra>
// kernel: tpu_custom_call.1
= control target key start
LH: loop header
LB: loop body
LE: loop exit
PB: predicated region body
PF: predicated region fallthrough
CT: control target
= control target key end

     0   :  { %8 = vsyncpa [#allocation3], 0  ;;  %s287_s0 = inlined_call_operand.hbm [shape: f32[16,32], index: 0, kind: input, shape index: {}]   ;;  %s288_s1 = inlined_call_operand.hbm [shape: f32[32,32], index: 1, kind: input, shape index: {}]   ;;  %s289_s2 = inlined_call_operand.vmem [shape: f32[1,32], index: 2, kind: input, shape index: {}]   ;;  %s290_s3 = inlined_call_operand.hbm [shape: f32[16,32], index: 3, kind: output, shape index: {}]  }
   0x1   :  { %9 = vsyncpa [#allocation6], 0 }
   0x2   :  { %10 = vsyncpa [#allocation4], 0  ;;  %s15_s14 = sshll.u32 %s287_s0, 4  ;;  %s235_s15 = smov [#allocation2]   ;;  %s16_s14 = int_to_ptr.hbm [resolvable:$true] %s15_s14 }
   0x3   :  { %s17_s16 = sshll.u32 %s235_s15, 4  ;;  %s28_s19 = sshll.u32 %s288_s1, 4  ;;  %s18_s16 = int_to_ptr.vmem [resolvable:$true] %s17_s16  ;;  %s29_s19 = int_to_ptr.hbm [resolvable:$true] %s28_s19 }
   0x4   :  { %s236_s20 = smov 128   ;;  %s237_s21 = smov 8  }
   0x5   :  { %23 = dma.hbm_to_vmem [thread:$0]  %s16_s14, 256, %s18_s16, [#allocation3], %s236_s20, %s236_s20, %s237_s21  }
   0x6   :  { %s238_s22 = smov [#allocation5]  }
   0x7   :  { %s30_s23 = sshll.u32 %s238_s22, 4  ;;  %s31_s23 = int_to_ptr.vmem [resolvable:$true] %s30_s23 }
   0x8   :  { %36 = dma.hbm_to_vmem [thread:$0]  %s29_s19, 512, %s31_s23, [#allocation6], %s236_s20, %s236_s20, %s237_s21  }
   0x9   :  { %229 = dma.done.wait [#allocation3], 256  }
   0xa   :  { %230 = vsyncadd [#allocation3], 4294967040 }
   0xb   :  { %231 = dma.done.wait [#allocation6], 512  }
   0xc   :  { %232 = vsyncadd [#allocation6], 4294966784  ;;  %v47_v0 = vld [vmem:[#allocation2] sm:$0xff]  ;;  %vm51_vm0 = vcmask 261120   ;;  %v48_v2 = vld [vmem:[#allocation2 + $0x8] sm:$0xff]  ;;  %s239_s24 = smov [#allocation7]  }
   0xd   :  { %v49_v1 = vmul.f32 %v47_v0, %v47_v0  ;;  %v50_v4 = vmul.f32 %v48_v2, %v48_v2  ;;  %v83_v6 = vld [vmem:[#allocation5 + $0x18] sm:$0xff]  ;;  %v82_v7 = vld [vmem:[#allocation5 + $0x10] sm:$0xff]  ;;  %v81_v8 = vld [vmem:[#allocation5 + $0x8] sm:$0xff]  ;;  %s125_s25 = sshll.u32 %s239_s24, 4  ;;  %s127_s28 = sshll.u32 %s290_s3, 4  ;;  %s126_s25 = int_to_ptr.vmem [resolvable:$true] %s125_s25  ;;  %s128_s28 = int_to_ptr.hbm [resolvable:$true] %s127_s28 }
   0xe   :  { %106 = vmatpush.msra.mxu0 %v83_v6  ;;  %143 = vmatpush.msra.mxu1 %v83_v6  ;;  %v80_v9 = vld [vmem:[#allocation5] sm:$0xff]  ;;  %v152_v28 = vld [vmem:[%s289_s2] ss:$0 sm:$0xff] }
   0xf   :  { %v52_v3 = vsel %vm51_vm0, %v49_v1, 0.0  ;;  %v55_v5 = vsel %vm51_vm0, %v50_v4, 0.0 }
  0x10   :  { %53 = vadd.xlane.f32.xlu0 %v52_v3  ;;  %107 = vmatpush.msra.mxu0 %v82_v7 }
  0x11   :  { %144 = vmatpush.msra.mxu1 %v82_v7 }
  0x12   :  { %108 = vmatpush.msra.mxu0 %v81_v8 }
  0x13   :  { %145 = vmatpush.msra.mxu1 %v81_v8 }
  0x14   :  { %109 = vmatpush.msra.mxu0 %v80_v9 }
  0x15   :  { %146 = vmatpush.msra.mxu1 %v80_v9 }
  0x18   :  { %56 = vadd.xlane.f32.xlu0 %v55_v5 }
  0x83   :  { %v54_v10 = vpop.xlane.xlu0 %53 }
  0x84   :  { %153 = vrsqrt.f32 %v54_v10  ;;  %vm64_vm2 = vweird.f32 %v54_v10 }
  0x8a   :  { %v154_v11 = vpop.eup %153 }
  0x8b   :  { %v59_v12 = vmul.f32 %v154_v11, %v54_v10  ;;  %v57_v13 = vpop.xlane.xlu0 %56  ;;  %vm65_vm1 = vweird.f32 %v154_v11 }
  0x8c   :  { %155 = vrsqrt.f32 %v57_v13  ;;  %vm66_vm3 = vmor %vm64_vm2, %vm65_vm1  ;;  %vm74_vm5 = vweird.f32 %v57_v13 }
  0x8d   :  { %v60_v14 = vmul.f32 %v154_v11, %v59_v12 }
  0x8f   :  { %v61_v15 = vmul.f32 0.5, %v60_v14 }
  0x91   :  { %v62_v16 = vsub.f32 1.5, %v61_v15 }
  0x92   :  { %v156_v17 = vpop.eup %155 }
  0x93   :  { %v63_v18 = vmul.f32 %v154_v11, %v62_v16  ;;  %v69_v19 = vmul.f32 %v156_v17, %v57_v13  ;;  %vm75_vm4 = vweird.f32 %v156_v17 }
  0x94   :  { %vm76_vm6 = vmor %vm74_vm5, %vm75_vm4 }
  0x95   :  { %v70_v20 = vmul.f32 %v156_v17, %v69_v19  ;;  %v67_v21 = vsel %vm66_vm3, %v154_v11, %v63_v18 }
  0x96   :  { %v78_v22 = vmul.f32 %v67_v21, %v47_v0 }
  0x97   :  { %v71_v23 = vmul.f32 0.5, %v70_v20 }
  0x98   :  { %141 = vmatmul.msk.f32.vlgmr.msra.gmra.mxu0 %vm51_vm0, %v78_v22 }
  0x99   :  { %v72_v24 = vsub.f32 1.5, %v71_v23 }
  0x9b   :  { %v73_v25 = vmul.f32 %v156_v17, %v72_v24 }
  0x9d   :  { %v77_v26 = vsel %vm76_vm6, %v156_v17, %v73_v25 }
  0x9e   :  { %v79_v27 = vmul.f32 %v77_v26, %v48_v2 }
  0xa0   :  { %142 = vmatmul.msk.f32.vlgmr.msra.gmra.mxu1 %vm51_vm0, %v79_v27 }
 0x115   :  { %v111_v29 = vpop.f32.mrf.mxu0 }
 0x116   :  { %v112_v30 = vadd.f32 %v152_v28, %v111_v29 }
 0x118   :  { %v117_v31 = vadd.f32 %v112_v30, %v78_v22 }
 0x11a   :  { %119 = vst.msk [vmem:[#allocation7] sm:$0xff] %vm51_vm0, %v117_v31 }
 0x11d   :  { %v114_v32 = vpop.f32.mrf.mxu1 }
 0x11e   :  { %v115_v33 = vadd.f32 %v152_v28, %v114_v32 }
 0x120   :  { %v118_v34 = vadd.f32 %v115_v33, %v79_v27 }
 0x122   :  { %120 = vst.msk [vmem:[#allocation7 + $0x8] sm:$0xff] %vm51_vm0, %v118_v34 }
 0x123   :  { %133 = dma.vmem_to_hbm [thread:$0]  %s126_s25, 256, %s128_s28, [#allocation4], %s236_s20, %s236_s20, %s237_s21  }
 0x124   :  { %233 = dma.done.wait [#allocation4], 256  }
 0x125   :  { %234 = vsyncadd [#allocation4], 4294967040 }
 0x126   :  { %138 = vsyncpa [#allocation3], 1 }
 0x127   :  { %139 = vsyncpa [#allocation6], 1 }
 0x128   :  { %140 = vsyncpa [#allocation4], 1 }

</bundles_post_ra>
